<compile_context>
chip_gen: v6e
topology: v6e:2x2x1
jax: 0.10.0
libtpu: 0.0.40
codegen_flags: <defaults>
</compile_context>

<pallas_src>
import math
import functools

import jax
import jax.numpy as jnp
from jax.experimental import pallas as pl
from jax.experimental.pallas import tpu as pltpu


# ---------------------------------------------------------------------------
# Parameter construction (deterministic, mirrors PyTorch __init__)
# ---------------------------------------------------------------------------
def make_pe_table(d_model: int, max_len: int = 5000) -> jnp.ndarray:
    """Builds the [max_len, 1, d_model] sinusoidal table (same as the module).

    Also works for odd d_model (the classic PyTorch snippet breaks there).
    """
    position = jnp.arange(0, max_len, dtype=jnp.float32)[:, None]            # [L, 1]
    div_term = jnp.exp(
        jnp.arange(0, d_model, 2, dtype=jnp.float32) * (-math.log(10000.0) / d_model)
    )                                                                         # [ceil(D/2)]
    angles = position * div_term                                              # [L, ceil(D/2)]
    pe = jnp.zeros((max_len, d_model), dtype=jnp.float32)
    pe = pe.at[:, 0::2].set(jnp.sin(angles))
    pe = pe.at[:, 1::2].set(jnp.cos(angles[:, : d_model // 2]))
    # .unsqueeze(0).transpose(0, 1) -> [max_len, 1, d_model]
    return pe[:, None, :]


# ---------------------------------------------------------------------------
# Pallas kernels (pure jnp ops -> lower on TPU and in interpret mode)
# ---------------------------------------------------------------------------
def _tile_pe(pe, reps):
    """Broadcast the per-position PE row over the (folded) batch axis."""
    if reps > 1:
        pe = jnp.tile(pe, (1,) * (pe.ndim - 1) + (reps,))
    return pe


def _pe_add_kernel(reps, x_ref, pe_ref, o_ref):
    # Elementwise (broadcasted) add on the VPU; purely HBM-bandwidth bound.
    o_ref[...] = x_ref[...] + _tile_pe(pe_ref[...], reps)


def _pe_add_mask_kernel(reps, x_ref, pe_ref, m_ref, o_ref):
    # Training path: mask already holds 0 or 1/(1-p) -> fused add + dropout.
    o_ref[...] = (x_ref[...] + _tile_pe(pe_ref[...], reps)) * m_ref[...]


# ---------------------------------------------------------------------------
# Wrapper
# ---------------------------------------------------------------------------
_TARGET_TILE_BYTES = 4 << 20   # ~4 MiB x-tile amortizes the ~0.35 us/step overhead


def positional_encoding(x, pe_table, *, dropout_p=0.1, training=False,
                        rng_key=None, target_tile_bytes=_TARGET_TILE_BYTES,
                        donate_x=False):
    """x: [S, B, D]; pe_table: [max_len, 1, D].  Returns [S, B, D]."""
    S, B, D = x.shape
    dtype = x.dtype
    itemsize = jnp.dtype(dtype).itemsize
    pe_slice = pe_table[:S].astype(dtype)                     # [S, 1, D]
    row_bytes = B * D * itemsize

    use_mask = bool(training) and dropout_p > 0.0
    if use_mask and dropout_p >= 1.0:
        # nn.Dropout(p=1.0) zeroes everything; avoid 1/(1-p) div-by-zero.
        return jnp.zeros_like(x)
    if use_mask:
        if rng_key is None:
            rng_key = jax.random.PRNGKey(0)
        keep = jax.random.bernoulli(rng_key, 1.0 - dropout_p, shape=(S, B, D))
        scale = jnp.asarray(1.0 / (1.0 - dropout_p), dtype=dtype)
        mask3d = keep.astype(dtype) * scale                   # 0 or 1/(1-p)

    if row_bytes <= target_tile_bytes:
        # ---- Layout A: fold (B, D) onto the lane axis; grid over S only ----
        # Sublane axis = ts (dense multiple of 8), lane axis = B*D -> dense
        # stores even when B < 8.  pe stays [ts, D]; the kernel tiles it by B.
        if S <= 8 or target_tile_bytes // row_bytes >= S:
            ts = S
        else:
            ts = max(8, ((target_tile_bytes // row_bytes) // 8) * 8)
        grid = (pl.cdiv(S, ts),)
        x_spec = pl.BlockSpec((ts, B * D), lambda i: (i, 0))
        pe_spec = pl.BlockSpec((ts, D), lambda i: (i, 0))
        out_struct = jax.ShapeDtypeStruct((S, B * D), dtype)
        reps = B
        inputs = [x.reshape(S, B * D), pe_slice.reshape(S, D)]
        specs = [x_spec, pe_spec]
        if use_mask:
            inputs.append(mask3d.reshape(S, B * D))
            specs.append(pl.BlockSpec((ts, B * D), lambda i: (i, 0)))
        tile_bytes = ts * row_bytes
        pe_tile_bytes = ts * D * itemsize
    else:
        # ---- Layout B: one S-row exceeds the budget; keep [S, B, D] and add
        # a feature-axis grid dimension (128-lane chunks) so tiles stay bounded.
        if D <= 128:
            td = D
        else:
            td = max(128, ((target_tile_bytes // max(8 * B * itemsize, 1)) // 128) * 128)
            td = min(td, D)
        ts = int(max(1, min(S, target_tile_bytes // max(B * td * itemsize, 1))))
        grid = (pl.cdiv(S, ts), pl.cdiv(D, td))
        x_spec = pl.BlockSpec((ts, B, td), lambda i, j: (i, 0, j))
        pe_spec = pl.BlockSpec((ts, 1, td), lambda i, j: (i, 0, j))
        out_struct = jax.ShapeDtypeStruct((S, B, D), dtype)
        reps = 1                                # (ts,1,td) broadcasts over B
        inputs = [x, pe_slice]
        specs = [x_spec, pe_spec]
        if use_mask:
            inputs.append(mask3d)
            specs.append(pl.BlockSpec((ts, B, td), lambda i, j: (i, 0, j)))
        tile_bytes = ts * B * td * itemsize
        pe_tile_bytes = ts * td * itemsize

    # VMEM limit sized to the double-buffered footprint (x in, out, [mask], pe)
    # plus headroom; capped well under v7x's 64 MiB physical VMEM.
    n_big = 3 if use_mask else 2
    vmem_needed = 2 * (n_big * tile_bytes + pe_tile_bytes) + (2 << 20)
    vmem_limit = int(min(max(vmem_needed, 32 << 20), 48 << 20))
    cparams = pltpu.CompilerParams(
        dimension_semantics=("parallel",) * len(grid),
        vmem_limit_bytes=vmem_limit,
    )

    kernel = (functools.partial(_pe_add_mask_kernel, reps) if use_mask
              else functools.partial(_pe_add_kernel, reps))
    io_aliases = {0: 0} if donate_x else {}

    out = pl.pallas_call(
        kernel,
        out_shape=out_struct,
        grid=grid,
        in_specs=specs,
        out_specs=specs[0],
        input_output_aliases=io_aliases,
        compiler_params=cparams,
    )(*inputs)

    return out.reshape(S, B, D)


# ---------------------------------------------------------------------------
# Main
# ---------------------------------------------------------------------------
if __name__ == "__main__":
    S, B, D = 8, 2, 32
    MAX_LEN = 64

    key = jax.random.PRNGKey(0)
    x = jax.random.normal(key, (S, B, D), dtype=jnp.float32)
    pe_table = make_pe_table(D, MAX_LEN)
    ref = x + pe_table[:S]                                   # [S, B, D]

    # ---- Eval-mode forward (dropout == identity): deterministic check ----
    out = positional_encoding(x, pe_table, dropout_p=0.1, training=False)
    out = jax.block_until_ready(out)
    assert out.shape == (S, B, D)
    assert jnp.allclose(out, ref, atol=1e-6, rtol=1e-6)

    # ---- Force the 3-D (layout B) path with a tiny tile budget: same math ----
    out_b = positional_encoding(x, pe_table, dropout_p=0.1, training=False,
                                target_tile_bytes=128)
    out_b = jax.block_until_ready(out_b)
    assert jnp.allclose(out_b, ref, atol=1e-6, rtol=1e-6)

    # ---- Training-mode forward (inverted dropout): structural sanity ----
    out_tr = positional_encoding(x, pe_table, dropout_p=0.5, training=True,
                                 rng_key=jax.random.PRNGKey(123))
    out_tr = jax.block_until_ready(out_tr)
    assert out_tr.shape == (S, B, D)
    kept = out_tr != 0.0
    # Every surviving element must equal 2 * (x + pe); dropped elements are 0.
    assert jnp.allclose(jnp.where(kept, out_tr, 2.0 * ref), 2.0 * ref,
                        atol=1e-5, rtol=1e-5)
    drop_rate = 1.0 - float(jnp.mean(kept.astype(jnp.float32)))
    assert 0.2 < drop_rate < 0.8, f"unexpected drop rate {drop_rate}"

    print("KERNEL_OK")
</pallas_src>

<mosaic_0001>
module attributes {stable_mosaic.version = 11 : i64} {
  func.func @_pe_add_kernel(%arg0: i32, %arg1: memref<8x64xf32, #tpu.memory_space<vmem>>, %arg2: memref<8x32xf32, #tpu.memory_space<vmem>>, %arg3: memref<8x64xf32, #tpu.memory_space<vmem>>) attributes {dimension_semantics = [#tpu.dimension_semantics<parallel>], iteration_bounds = array<i64: 1>, scalar_prefetch = 0 : i64, scratch_operands = 0 : i64, tpu.core_type = #tpu.core_type<tc>, window_params = [{transform_indices = @transform_0, window_bounds = array<i64: 8, 64>}, {transform_indices = @transform_1, window_bounds = array<i64: 8, 32>}, {transform_indices = @transform_2, window_bounds = array<i64: 8, 64>}]} {
    %c0 = arith.constant 0 : index
    %c0_0 = arith.constant 0 : index
    %0 = vector.load %arg1[%c0, %c0_0] : memref<8x64xf32, #tpu.memory_space<vmem>>, vector<8x64xf32>
    %c0_1 = arith.constant 0 : index
    %c0_2 = arith.constant 0 : index
    %1 = vector.load %arg2[%c0_1, %c0_2] : memref<8x32xf32, #tpu.memory_space<vmem>>, vector<8x32xf32>
    %2 = tpu.concatenate %1, %1 in 1 : vector<8x32xf32>, vector<8x32xf32> -> vector<8x64xf32>
    %3 = arith.addf %0, %2 : vector<8x64xf32>
    %c0_3 = arith.constant 0 : index
    %c0_4 = arith.constant 0 : index
    %4 = vector.load %arg3[%c0_3, %c0_4] : memref<8x64xf32, #tpu.memory_space<vmem>>, vector<8x64xf32>
    tpu.vector_store %arg3[%c0_3, %c0_4], %3 {strides = array<i32>} : memref<8x64xf32, #tpu.memory_space<vmem>>, vector<8x64xf32>,
    return
  }
  func.func @transform_0(%arg0: i32) -> (i32, i32) {
    %c0_i32 = arith.constant 0 : i32
    %c0_i32_0 = arith.constant 0 : i32
    return %arg0, %c0_i32 : i32, i32
  }
  func.func @transform_1(%arg0: i32) -> (i32, i32) {
    %c0_i32 = arith.constant 0 : i32
    %c0_i32_0 = arith.constant 0 : i32
    return %arg0, %c0_i32 : i32, i32
  }
  func.func @transform_2(%arg0: i32) -> (i32, i32) {
    %c0_i32 = arith.constant 0 : i32
    %c0_i32_0 = arith.constant 0 : i32
    return %arg0, %c0_i32 : i32, i32
  }
}

</mosaic_0001>

<bundles_post_ra>
// kernel: tpu_custom_call.1
= control target key start
LH: loop header
LB: loop body
LE: loop exit
PB: predicated region body
PF: predicated region fallthrough
CT: control target
= control target key end

     0   :  { %7 = vsyncpa [#allocation3], 0  ;;  %s161_s0 = inlined_call_operand.hbm [shape: f32[8,64], index: 0, kind: input, shape index: {}]   ;;  %s162_s1 = inlined_call_operand.hbm [shape: f32[8,32], index: 1, kind: input, shape index: {}]   ;;  %s163_s2 = inlined_call_operand.hbm [shape: f32[8,64], index: 2, kind: output, shape index: {}]  }
   0x1   :  { %8 = vsyncpa [#allocation6], 0 }
   0x2   :  { %9 = vsyncpa [#allocation4], 0  ;;  %s133_s9 = smov [#allocation2]   ;;  %s134_s11 = smov [#allocation5]  }
   0x3   :  { %s16_s10 = sshll.u32 %s133_s9, 4  ;;  %s26_s12 = sshll.u32 %s134_s11, 4  ;;  %s17_s10 = int_to_ptr.vmem [resolvable:$true] %s16_s10  ;;  %s27_s12 = int_to_ptr.vmem [resolvable:$true] %s26_s12 }
   0x4   :  { %s75_s13 = scalar_lea.vmem %s17_s10, 128  ;;  %p80_p1 = scmp.lt.s32.totalorder %s17_s10, %s17_s10 }
   0x5   :  { %p76_p0 = scmp.ne.s32.totalorder %s17_s10, %s75_s13  ;;  %p81_p2 = scmp.lt.s32.totalorder %s75_s13, %s75_s13 }
   0x7   :  { %p82_p3 = por %p81_p2, %p80_p1 }
   0x9   :  { %p83_p4 = pnand %p82_p3, %p76_p0 }
   0xb   :  { %86 = shalt.err (!%p83_p4)
}
   0xc   :  { %19 = dma.hbm_to_vmem [thread:$0]  %s161_s0, 128, %s17_s10, [#allocation3]  }
   0xd   :  { %s95_s16 = scalar_lea.vmem %s27_s12, 128  ;;  %p100_p6 = scmp.lt.s32.totalorder %s27_s12, %s27_s12 }
   0xe   :  { %p96_p5 = scmp.ne.s32.totalorder %s27_s12, %s95_s16  ;;  %p101_p7 = scmp.lt.s32.totalorder %s95_s16, %s95_s16 }
  0x10   :  { %p102_p8 = por %p101_p7, %p100_p6 }
  0x12   :  { %p103_p9 = pnand %p102_p8, %p96_p5 }
  0x14   :  { %106 = shalt.err (!%p103_p9)
}
  0x15   :  { %29 = dma.hbm_to_vmem [thread:$0]  %s162_s1, 128, %s27_s12, [#allocation6]  }
  0x16   :  { %127 = dma.done.wait [#allocation3], 128  }
  0x17   :  { %128 = vsyncadd [#allocation3], 4294967168 }
  0x18   :  { %129 = dma.done.wait [#allocation6], 128  }
  0x19   :  { %130 = vsyncadd [#allocation6], 4294967168  ;;  %v37_v0 = vld [vmem:[#allocation5] sm:$0xff]  ;;  %s135_s19 = smov 32   ;;  %vm42_vm0 = vcmask 261120   ;;  %v36_v1 = vld [vmem:[#allocation2] sm:$0xff] }
  0x1a   :  { %39 = vrot.lane.b32.xlu0 %v37_v0, %s135_s19  ;;  %s136_s0 = smov [#allocation7]   ;;  %vm45_vm1 = vcmask 523264  }
  0x1b   :  { %s53_s20 = sshll.u32 %s136_s0, 4  ;;  %s54_s20 = int_to_ptr.vmem [resolvable:$true] %s53_s20 }
  0x1c   :  { %s107_s21 = scalar_lea.vmem %s54_s20, 128  ;;  %p112_p11 = scmp.lt.s32.totalorder %s54_s20, %s54_s20 }
  0x1d   :  { %p108_p10 = scmp.ne.s32.totalorder %s54_s20, %s107_s21  ;;  %p113_p12 = scmp.lt.s32.totalorder %s107_s21, %s107_s21 }
  0x1f   :  { %p114_p13 = por %p113_p12, %p112_p11 }
  0x21   :  { %p115_p0 = pnand %p114_p13, %p108_p10 }
  0x8c   :  { %v40_v2 = vpop.permute.xlu0 %39 }
  0x8d   :  { %v43_v3 = vsel %vm42_vm0, %v37_v0, %v40_v2 }
  0x8e   :  { %v44_v4 = vadd.f32 %v43_v3, %v36_v1 }
  0x90   :  { %46 = vst.msk [vmem:[#allocation7] sm:$0xff] %vm45_vm1, %v44_v4 }
  0x91   :  { %118 = shalt.err (!%p115_p0)
}
  0x92   :  { %56 = dma.vmem_to_hbm [thread:$0]  %s54_s20, 128, %s163_s2, [#allocation4]  }
  0x93   :  { %131 = dma.done.wait [#allocation4], 128  }
  0x94   :  { %132 = vsyncadd [#allocation4], 4294967168 }
  0x95   :  { %60 = vsyncpa [#allocation3], 1 }
  0x96   :  { %61 = vsyncpa [#allocation6], 1 }
  0x97   :  { %62 = vsyncpa [#allocation4], 1 }

</bundles_post_ra>
